<compile_context>
chip_gen: v5e
topology: v5e:2x2
jax: 0.10.0
libtpu: 0.0.40
codegen_flags: <defaults>
</compile_context>

<pallas_src>
import numpy as np
import jax
import jax.numpy as jnp
from jax import lax
from jax.experimental import pallas as pl
from jax.experimental.pallas import tpu as pltpu

# ---------------- problem sizes ----------------
N, C_IN, H, W = 2, 4, 16, 16
C_OUT = 8
K = 3
PAD = 1
HO, WO = H // 2, W // 2
HW = H * W                    # 256 -> lane axis
SB = HO * WO                  # 64 per subband
KK = K * K * C_IN + 1         # 37 im2col rows (+1 ones-row carrying the conv bias)
EPS = 1e-5


# ---------------- Pallas kernel ----------------
def down_conv_relu_bn_kernel(pat_ref, w_ref, pt_ref, prm_ref, out_ref, sub_ref):
    """One batch element per grid step, spatial-on-lanes layout.

    pat_ref : (1, KK, HW)     im2col patches (last row = 1.0 for the bias)
    w_ref   : (C_OUT, KK)     conv weight, bias folded into the last column
    pt_ref  : (HW, 4*SB)      fused Haar pooling matrix, packed columns [LL|LH|HL|HH]
    prm_ref : (C_OUT, 2)      fused inference-BN params: col 0 = scale, col 1 = shift
    out_ref : (1, C_OUT, HW)      conv output (channels-first, flat spatial)
    sub_ref : (1, C_OUT, 4*SB)    packed subbands; LL lanes already ReLU+BN'd
    """
    pat = pat_ref[0]                                                    # (KK, HW)

    # Conv2d(4, 8, 3, padding=1) as a single lane-dense im2col matmul.
    conv = jnp.dot(w_ref[...], pat, preferred_element_type=jnp.float32)  # (C_OUT, HW)
    out_ref[0] = conv

    # Haar wavelet pooling: one fused MXU matmul -> packed subbands on the lane axis.
    pooled = jnp.dot(conv, pt_ref[...], preferred_element_type=jnp.float32)  # (C_OUT, 4*SB)

    # ReLU + BatchNorm (inference) applied to the LL lanes only (lanes [0, SB)).
    prm = prm_ref[...]                                                  # (C_OUT, 2)
    scale = prm[:, 0:1]                                                 # (C_OUT, 1)
    shift = prm[:, 1:2]                                                 # (C_OUT, 1)
    ll_bn = jnp.maximum(pooled, 0.0) * scale + shift                    # full-width VPU ops
    lane = lax.broadcasted_iota(jnp.int32, pooled.shape, 1)
    sub_ref[0] = jnp.where(lane < SB, ll_bn, pooled)


# ---------------- glue: fused Haar pooling matrix ----------------
def haar_pool_matrix():
    # WCT2 WavePool convention (matches PyTorch depthwise 2x2 stride-2 cross-correlation).
    filts = np.array([
        [[0.5, 0.5], [0.5, 0.5]],      # LL
        [[-0.5, 0.5], [-0.5, 0.5]],    # LH
        [[-0.5, -0.5], [0.5, 0.5]],    # HL
        [[0.5, -0.5], [-0.5, 0.5]],    # HH
    ], np.float32)
    Pt = np.zeros((HW, 4 * SB), np.float32)
    for s in range(4):
        for i in range(HO):
            for j in range(WO):
                q = s * SB + i * WO + j
                for dh in range(2):
                    for dw in range(2):
                        Pt[(2 * i + dh) * W + (2 * j + dw), q] = filts[s, dh, dw]
    return jnp.asarray(Pt)


# ---------------- wrapper ----------------
def down_conv_relu_bn(x_nchw, w_oihw, bias, gamma, beta, run_mean, run_var):
    x = x_nchw.astype(jnp.float32)
    xpad = jnp.pad(x, ((0, 0), (0, 0), (PAD, PAD), (PAD, PAD)))         # padded NCHW

    # im2col patches: (N, KK, HW), row order (kh, kw, cin), last row = ones (bias).
    rows = []
    for kh in range(K):
        for kw in range(K):
            rows.append(xpad[:, :, kh:kh + H, kw:kw + W].reshape(N, C_IN, HW))
    rows.append(jnp.ones((N, 1, HW), jnp.float32))
    pat = jnp.concatenate(rows, axis=1)                                  # (N, KK, HW)

    # Conv weight as (C_OUT, (kh,kw,cin)) with the bias as an extra column.
    w2 = jnp.transpose(w_oihw.astype(jnp.float32), (0, 2, 3, 1)).reshape(C_OUT, K * K * C_IN)
    w2 = jnp.concatenate([w2, bias.reshape(C_OUT, 1).astype(jnp.float32)], axis=1)  # (C_OUT, KK)

    # Fused inference BatchNorm: y = relu(x) * scale + shift.
    scale = gamma.astype(jnp.float32) * lax.rsqrt(run_var.astype(jnp.float32) + EPS)
    shift = beta.astype(jnp.float32) - run_mean.astype(jnp.float32) * scale
    prm = jnp.stack([scale, shift], axis=1)                              # (C_OUT, 2)

    Pt = haar_pool_matrix()                                              # (HW, 4*SB)

    grid_spec = pltpu.PrefetchScalarGridSpec(
        num_scalar_prefetch=0,
        grid=(N,),
        in_specs=[
            pl.BlockSpec((1, KK, HW), lambda n: (n, 0, 0)),
            pl.BlockSpec((C_OUT, KK), lambda n: (0, 0)),
            pl.BlockSpec((HW, 4 * SB), lambda n: (0, 0)),   # constant block -> DMA'd once
            pl.BlockSpec((C_OUT, 2), lambda n: (0, 0)),
        ],
        out_specs=[
            pl.BlockSpec((1, C_OUT, HW), lambda n: (n, 0, 0)),
            pl.BlockSpec((1, C_OUT, 4 * SB), lambda n: (n, 0, 0)),
        ],
    )

    out_shapes = (
        jax.ShapeDtypeStruct((N, C_OUT, HW), jnp.float32),
        jax.ShapeDtypeStruct((N, C_OUT, 4 * SB), jnp.float32),
    )

    conv_flat, packed = pl.pallas_call(
        down_conv_relu_bn_kernel,
        out_shape=out_shapes,
        grid_spec=grid_spec,
        compiler_params=pltpu.CompilerParams(dimension_semantics=("parallel",)),
    )(pat, w2, Pt, prm)

    # Outputs are already channels-first and lane-dense: only reshapes/slices remain.
    out = conv_flat.reshape(N, C_OUT, H, W)                              # NCHW
    sub = packed.reshape(N, C_OUT, 4, HO, WO)
    ll, lh, hl, hh = sub[:, :, 0], sub[:, :, 1], sub[:, :, 2], sub[:, :, 3]
    # match PyTorch module return order: (LL, LH, HL, HH, out)
    return ll, lh, hl, hh, out


# ---------------- pure-JAX reference (correctness check) ----------------
def reference(x_nchw, w_oihw, bias, gamma, beta, run_mean, run_var):
    x = jnp.transpose(x_nchw, (0, 2, 3, 1))
    w_hwio = jnp.transpose(w_oihw, (2, 3, 1, 0))
    out = lax.conv_general_dilated(
        x, w_hwio, window_strides=(1, 1), padding="SAME",
        dimension_numbers=("NHWC", "HWIO", "NHWC"),
        precision=lax.Precision.HIGHEST) + bias
    a = out[:, 0::2, 0::2, :]
    b = out[:, 0::2, 1::2, :]
    c = out[:, 1::2, 0::2, :]
    d = out[:, 1::2, 1::2, :]
    ll = 0.5 * (a + b + c + d)
    lh = 0.5 * (-a + b - c + d)
    hl = 0.5 * (-a - b + c + d)
    hh = 0.5 * (a - b - c + d)
    ll = jnp.maximum(ll, 0.0)
    ll = (ll - run_mean) * lax.rsqrt(run_var + EPS) * gamma + beta
    nchw = lambda t: jnp.transpose(t, (0, 3, 1, 2))
    return nchw(ll), nchw(lh), nchw(hl), nchw(hh), nchw(out)


if __name__ == "__main__":
    key = jax.random.PRNGKey(0)
    kx, kw, kb, kg, kbt, km, kv = jax.random.split(key, 7)

    x = jax.random.normal(kx, (N, C_IN, H, W), jnp.float32)
    w = 0.1 * jax.random.normal(kw, (C_OUT, C_IN, K, K), jnp.float32)
    bias = 0.1 * jax.random.normal(kb, (C_OUT,), jnp.float32)
    gamma = 1.0 + 0.1 * jax.random.normal(kg, (C_OUT,), jnp.float32)
    beta = 0.1 * jax.random.normal(kbt, (C_OUT,), jnp.float32)
    run_mean = 0.1 * jax.random.normal(km, (C_OUT,), jnp.float32)
    run_var = 0.5 + 0.5 * jnp.abs(jax.random.normal(kv, (C_OUT,), jnp.float32))

    got = down_conv_relu_bn(x, w, bias, gamma, beta, run_mean, run_var)
    got = jax.block_until_ready(got)

    want = reference(x, w, bias, gamma, beta, run_mean, run_var)
    for g, r in zip(got, want):
        np.testing.assert_allclose(np.asarray(g), np.asarray(r), rtol=1e-3, atol=1e-3)

    print("KERNEL_OK")
</pallas_src>

<mosaic_0001>
module attributes {stable_mosaic.version = 11 : i64} {
  func.func @down_conv_relu_bn_kernel(%arg0: i32, %arg1: memref<1x37x256xf32, #tpu.memory_space<vmem>>, %arg2: memref<8x37xf32, #tpu.memory_space<vmem>>, %arg3: memref<256x256xf32, #tpu.memory_space<vmem>>, %arg4: memref<8x2xf32, #tpu.memory_space<vmem>>, %arg5: memref<1x8x256xf32, #tpu.memory_space<vmem>>, %arg6: memref<1x8x256xf32, #tpu.memory_space<vmem>>) attributes {dimension_semantics = [#tpu.dimension_semantics<parallel>], iteration_bounds = array<i64: 2>, scalar_prefetch = 0 : i64, scratch_operands = 0 : i64, tpu.core_type = #tpu.core_type<tc>, window_params = [{transform_indices = @transform_0, window_bounds = array<i64: 1, 37, 256>}, {pipeline_mode = #tpu.pipeline_mode<synchronous>, transform_indices = @transform_1, window_bounds = array<i64: 8, 37>}, {pipeline_mode = #tpu.pipeline_mode<synchronous>, transform_indices = @transform_2, window_bounds = array<i64: 256, 256>}, {pipeline_mode = #tpu.pipeline_mode<synchronous>, transform_indices = @transform_3, window_bounds = array<i64: 8, 2>}, {transform_indices = @transform_4, window_bounds = array<i64: 1, 8, 256>}, {transform_indices = @transform_5, window_bounds = array<i64: 1, 8, 256>}]} {
    %c0 = arith.constant 0 : index
    %c0_0 = arith.constant 0 : index
    %c0_1 = arith.constant 0 : index
    %0 = vector.load %arg1[%c0, %c0_0, %c0_1] : memref<1x37x256xf32, #tpu.memory_space<vmem>>, vector<1x37x256xf32>
    %1 = vector.shape_cast %0 : vector<1x37x256xf32> to vector<37x256xf32>
    %c0_2 = arith.constant 0 : index
    %c0_3 = arith.constant 0 : index
    %2 = vector.load %arg2[%c0_2, %c0_3] : memref<8x37xf32, #tpu.memory_space<vmem>>, vector<8x37xf32>
    %cst = arith.constant dense<0.000000e+00> : vector<8x256xf32>
    %3 = tpu.matmul %2, %1, %cst {dimension_numbers = #tpu.dot_dimension_numbers<[1], [0], [0], [1], [0, 0, 1, 1], [], []>} : vector<8x37xf32>, vector<37x256xf32>, vector<8x256xf32> -> vector<8x256xf32>
    %c0_4 = arith.constant 0 : index
    %c0_5 = arith.constant 0 : index
    %c0_6 = arith.constant 0 : index
    %4 = vector.load %arg5[%c0_4, %c0_5, %c0_6] : memref<1x8x256xf32, #tpu.memory_space<vmem>>, vector<1x8x256xf32>
    %5 = vector.shape_cast %4 : vector<1x8x256xf32> to vector<8x256xf32>
    %6 = vector.shape_cast %3 : vector<8x256xf32> to vector<1x8x256xf32>
    tpu.vector_store %arg5[%c0_4, %c0_5, %c0_6], %6 {strides = array<i32>} : memref<1x8x256xf32, #tpu.memory_space<vmem>>, vector<1x8x256xf32>,
    %c0_7 = arith.constant 0 : index
    %c0_8 = arith.constant 0 : index
    %7 = vector.load %arg3[%c0_7, %c0_8] : memref<256x256xf32, #tpu.memory_space<vmem>>, vector<256x256xf32>
    %cst_9 = arith.constant dense<0.000000e+00> : vector<8x256xf32>
    %8 = tpu.matmul %3, %7, %cst_9 {dimension_numbers = #tpu.dot_dimension_numbers<[1], [0], [0], [1], [0, 0, 1, 1], [], []>} : vector<8x256xf32>, vector<256x256xf32>, vector<8x256xf32> -> vector<8x256xf32>
    %c0_10 = arith.constant 0 : index
    %c0_11 = arith.constant 0 : index
    %9 = vector.load %arg4[%c0_10, %c0_11] : memref<8x2xf32, #tpu.memory_space<vmem>>, vector<8x2xf32>
    %10 = vector.extract_strided_slice %9 {offsets = [0, 0], sizes = [8, 1], strides = [1, 1]} : vector<8x2xf32> to vector<8x1xf32>
    %11 = vector.extract_strided_slice %9 {offsets = [0, 1], sizes = [8, 1], strides = [1, 1]} : vector<8x2xf32> to vector<8x1xf32>
    %cst_12 = arith.constant 0.000000e+00 : f32
    %12 = vector.broadcast %cst_12 : f32 to vector<8x256xf32>
    %13 = arith.maximumf %8, %12 : vector<8x256xf32>
    %14 = vector.broadcast %10 : vector<8x1xf32> to vector<8x256xf32>
    %15 = arith.mulf %13, %14 : vector<8x256xf32>
    %16 = vector.broadcast %11 : vector<8x1xf32> to vector<8x256xf32>
    %17 = arith.addf %15, %16 : vector<8x256xf32>
    %18 = tpu.iota {dimensions = array<i32: 1>} : vector<8x256xi32>
    %c64_i32 = arith.constant 64 : i32
    %19 = vector.broadcast %c64_i32 : i32 to vector<8x256xi32>
    %20 = arith.cmpi slt, %18, %19 : vector<8x256xi32>
    %21 = arith.select %20, %17, %8 : vector<8x256xi1>, vector<8x256xf32>
    %c0_13 = arith.constant 0 : index
    %c0_14 = arith.constant 0 : index
    %c0_15 = arith.constant 0 : index
    %22 = vector.load %arg6[%c0_13, %c0_14, %c0_15] : memref<1x8x256xf32, #tpu.memory_space<vmem>>, vector<1x8x256xf32>
    %23 = vector.shape_cast %22 : vector<1x8x256xf32> to vector<8x256xf32>
    %24 = vector.shape_cast %21 : vector<8x256xf32> to vector<1x8x256xf32>
    tpu.vector_store %arg6[%c0_13, %c0_14, %c0_15], %24 {strides = array<i32>} : memref<1x8x256xf32, #tpu.memory_space<vmem>>, vector<1x8x256xf32>,
    return
  }
  func.func @transform_0(%arg0: i32) -> (i32, i32, i32) {
    %c0_i32 = arith.constant 0 : i32
    %c0_i32_0 = arith.constant 0 : i32
    %c0_i32_1 = arith.constant 0 : i32
    return %arg0, %c0_i32, %c0_i32_0 : i32, i32, i32
  }
  func.func @transform_1(%arg0: i32) -> (i32, i32) {
    %c0_i32 = arith.constant 0 : i32
    %c0_i32_0 = arith.constant 0 : i32
    %c0_i32_1 = arith.constant 0 : i32
    return %c0_i32, %c0_i32_0 : i32, i32
  }
  func.func @transform_2(%arg0: i32) -> (i32, i32) {
    %c0_i32 = arith.constant 0 : i32
    %c0_i32_0 = arith.constant 0 : i32
    %c0_i32_1 = arith.constant 0 : i32
    return %c0_i32, %c0_i32_0 : i32, i32
  }
  func.func @transform_3(%arg0: i32) -> (i32, i32) {
    %c0_i32 = arith.constant 0 : i32
    %c0_i32_0 = arith.constant 0 : i32
    %c0_i32_1 = arith.constant 0 : i32
    return %c0_i32, %c0_i32_0 : i32, i32
  }
  func.func @transform_4(%arg0: i32) -> (i32, i32, i32) {
    %c0_i32 = arith.constant 0 : i32
    %c0_i32_0 = arith.constant 0 : i32
    %c0_i32_1 = arith.constant 0 : i32
    return %arg0, %c0_i32, %c0_i32_0 : i32, i32, i32
  }
  func.func @transform_5(%arg0: i32) -> (i32, i32, i32) {
    %c0_i32 = arith.constant 0 : i32
    %c0_i32_0 = arith.constant 0 : i32
    %c0_i32_1 = arith.constant 0 : i32
    return %arg0, %c0_i32, %c0_i32_0 : i32, i32, i32
  }
}

</mosaic_0001>

<bundles_post_ra>
// kernel: tpu_custom_call.1
= control target key start
LH: loop header
LB: loop body
LE: loop exit
PB: predicated region body
PF: predicated region fallthrough
CT: control target
= control target key end

     0   :  { %11 = vsyncpa [#allocation3], 0  ;;  %s1002_s0 = inlined_call_operand.vmem [shape: f32[2,37,256], index: 0, kind: input, shape index: {}]   ;;  %s1003_s1 = inlined_call_operand.vmem [shape: f32[8,37], index: 1, kind: input, shape index: {}]   ;;  %s1004_s2 = inlined_call_operand.hbm [shape: f32[256,256], index: 2, kind: input, shape index: {}]   ;;  %s1005_s3 = inlined_call_operand.vmem [shape: f32[8,2], index: 3, kind: input, shape index: {}]   ;;  %s1006_s4 = inlined_call_operand.hbm [shape: f32[2,8,256], index: 4, kind: output, shape index: {0}]   ;;  %s1007_s5 = inlined_call_operand.hbm [shape: f32[2,8,256], index: 5, kind: output, shape index: {1}]  }
   0x1   :  { %12 = vsyncpa [#allocation4], 0 }
   0x2   :  { %14 = vsyncpa [#allocation4 + $0x1], 0 }
   0x3   :  { %15 = vsyncpa [#allocation7], 0 }
   0x4   :  { %17 = vsyncpa [#allocation7 + $0x1], 0  ;;  %s875_s18 = smov 0   ;;  %s877_s19 = smov 0  }
   0x5   :  { %s879_s20 = smov 0   ;;  %s881_s21 = smov 0  }
   0x6 LB: > { %s896_s22 = sadd.s32 4294967295, %s838_s21   ;;  %s625_s23 = sadd.s32 4294967294, %s838_s21   ;;  %s838_s21 = sphi %s881_s21, %s1013_s21   ;;  %s834_s20 = sphi %s879_s20, %s1012_s20   ;;  %s830_s19 = sphi %s877_s19, %s1011_s19   ;;  %s826_s18 = sphi %s875_s18, %s1010_s18  }
   0x7   : > { %s900_s24 = sadd.s32 1, %s838_s21   ;;  %s119_s25 = sadd.s32 1, %s834_s20 }
   0x8   : > { %s116_s26 = ssub.s32 %s838_s21, %s900_s24  ;;  %p129_p0 = scmp.ne.s32.totalorder %s834_s20, %s830_s19 }
   0x9   : > { %p117_p1 = scmp.eq.s32.totalorder %s116_s26, 0  ;;  %p130_p2 = scmp.eq.s32.totalorder %s896_s22, 1 }
   0xa   : > { %p135_p3 = scmp.ne.s32.totalorder %s830_s19, %s826_s18  ;;  %p136_p4 = scmp.eq.s32.totalorder %s625_s23, 1 }
   0xb   : > { %s911_s27 = scalar_select %p117_p1, %s834_s20, %s119_s25  }
   0xc   : > { %p913_p5 = por %p130_p2, %p129_p0  ;;  %p917_p6 = por %p136_p4, %p135_p3 }
   0xd   : > { %p626_p7 = scmp.ge.s32.totalorder %s838_s21, 1  ;;  %p169_p8 = scmp.lt.s32.totalorder %s838_s21, 3 }
   0xe   : > { %p668_p9 = scmp.eq.s32.totalorder %s896_s22, 0  ;;  %s183_s7 = sshll.u32 %s1004_s2, 4  ;;  %s184_s7 = int_to_ptr.hbm [resolvable:$true] %s183_s7 }
   0xf   : > { %p170_p10 = pnand %p626_p7, %p169_p8  ;;  %s840_s8 = smov [#allocation2]  }
  0x10   : > { %s185_s9 = sshll.u32 %s840_s8, 4  ;;  %s841_s10 = smov 256   ;;  %s186_s9 = int_to_ptr.vmem [resolvable:$true] %s185_s9 }
  0x11   : > { %p657_p11 = pneg %p170_p10  ;;  %s842_s11 = smov 16  }
  0x12   : > { %212 = sbr.rel (%p170_p10) target bundleno = 311 (0x137), region = 36 }
  0x13   : > { %p658_p12 = pnand %p668_p9, %p657_p11 }
  0x15   : > { %660 = dma.hbm_to_vmem [thread:$0]  (!%p658_p12), %s184_s7, 8192, %s186_s9, [#allocation3], %s841_s10, %s841_s10, %s842_s11  }
  0x17   : > { %813 = dma.done.wait (%p668_p9), [#allocation3], 8192  }
  0x18   : > { %815 = vsyncadd (%p668_p9), [#allocation3], 4294959104  ;;  %p246_p13 = scmp.lt.s32.totalorder %s896_s22, 1  ;;  %vm266_vm0 = vcmask 1044480   ;;  %v345_v6 = vld [vmem:[#allocation2 + $0xf0] sm:$0xff]  ;;  %v343_v10 = vld [vmem:[#allocation2 + $0xe0] sm:$0xff] }
  0x19   : > { %379 = vmatpush.msra.mxu2 %v345_v6  ;;  %v377_v9 = vld [vmem:[#allocation2 + $0x1f0] sm:$0xff]  ;;  %v375_v11 = vld [vmem:[#allocation2 + $0x1e0] sm:$0xff]  ;;  %vm262_vm1 = vcmask 302080   ;;  %v346_v16 = vld [vmem:[#allocation2 + $0xf8] sm:$0xff]  ;;  %s945_s30 = sand.u32 1, %s830_s19   ;;  %s646_s9 = sshll.u32 %s896_s22, 4 }
  0x1a   : > { %s247_s12 = scalar_select %p246_p13, %s896_s22, 1  ;;  %399 = vmatpush.msra.mxu3 %v377_v9  ;;  %v341_v14 = vld [vmem:[#allocation2 + $0xd0] sm:$0xff]  ;;  %v261_v15 = vld [vmem:[%s1003_s1] sm:$0xff]  ;;  %v378_v17 = vld [vmem:[#allocation2 + $0x1f8] sm:$0xff] }
  0x1b   : > { %380 = vmatpush.msra.mxu2 %v343_v10  ;;  %v373_v18 = vld [vmem:[#allocation2 + $0x1d0] sm:$0xff]  ;;  %v339_v19 = vld [vmem:[#allocation2 + $0xc0] sm:$0xff]  ;;  %v344_v20 = vld [vmem:[#allocation2 + $0xe8] sm:$0xff]  ;;  %s631_s6 = sshll.u32 %s945_s30, 4  ;;  %s485_s14 = scalar_lea.sflag [#allocation4], %s945_s30 }
  0x1c   : > { %s648_s13 = smul.u32 80, %s247_s12  ;;  %400 = vmatpush.msra.mxu3 %v375_v11  ;;  %v376_v21 = vld [vmem:[#allocation2 + $0x1e8] sm:$0xff]  ;;  %v371_v22 = vld [vmem:[#allocation2 + $0x1c0] sm:$0xff]  ;;  %v337_v23 = vld [vmem:[#allocation2 + $0xb0] sm:$0xff]  ;;  %s238_s7 = scalar_lea.vmem [#allocation5], %s631_s6 }
  0x1d   : > { %381 = vmatpush.msra.mxu2 %v341_v14  ;;  %v342_v24 = vld [vmem:[#allocation2 + $0xd8] sm:$0xff]  ;;  %v369_v26 = vld [vmem:[#allocation2 + $0x1b0] sm:$0xff]  ;;  %v335_v27 = vld [vmem:[#allocation2 + $0xa0] sm:$0xff]  ;;  %s503_s8 = sshll.u32 %s238_s7, 4  ;;  %s501_s12 = scalar_lea.hbm %s1006_s4, %s646_s9  ;;  %s504_s8 = int_to_ptr.vmem [resolvable:$true] %s503_s8 }
  0x1e   : > { %s250_s16 = scalar_lea.vmem %s1002_s0, %s648_s13  ;;  %401 = vmatpush.msra.mxu3 %v373_v18  ;;  %v374_v25 = vld [vmem:[#allocation2 + $0x1d8] sm:$0xff]  ;;  %v340_v28 = vld [vmem:[#allocation2 + $0xc8] sm:$0xff]  ;;  %v367_v30 = vld [vmem:[#allocation2 + $0x1a0] sm:$0xff]  ;;  %s505_s13 = sshll.u32 %s501_s12, 4  ;;  %s506_s13 = int_to_ptr.hbm [resolvable:$true] %s505_s13 }
  0x1f   : > { %v259_v0 = vld [vmem:[%s250_s16 + $0x40] sm:$0x1f]  ;;  %v260_v1 = vld [vmem:[%s250_s16 + $0x48] sm:$0x1f]  ;;  %v257_v2 = vld [vmem:[%s250_s16 + $0x30] sm:$0xff]  ;;  %382 = vmatpush.msra.mxu2 %v339_v19  ;;  %s754_s15 = sshra.s32 %s506_s13, 4  ;;  %s755_s15 = int_to_ptr.hbm [resolvable:$true] %s754_s15 }
  0x20   : > { %634 = vmatpush.msk.msra.mxu0 %vm266_vm0, %v259_v0  ;;  %636 = vmatpush.msk.msra.mxu1 %vm266_vm0, %v260_v1  ;;  %v258_v3 = vld [vmem:[%s250_s16 + $0x38] sm:$0xff]  ;;  %v255_v4 = vld [vmem:[%s250_s16 + $0x20] sm:$0xff]  ;;  %v256_v5 = vld [vmem:[%s250_s16 + $0x28] sm:$0xff]  ;;  %s760_s25 = scalar_lea.hbm %s1006_s4, 32  ;;  %p761_p3 = scmp.lt.s32.totalorder %s755_s15, %s1006_s4 }
  0x21   : > { %v253_v7 = vld [vmem:[%s250_s16 + $0x10] sm:$0xff]  ;;  %v254_v8 = vld [vmem:[%s250_s16 + $0x18] sm:$0xff]  ;;  %v251_v12 = vld [vmem:[%s250_s16] sm:$0xff]  ;;  %402 = vmatpush.msra.mxu3 %v371_v22  ;;  %383 = vmatpush.msra.mxu2 %v337_v23 }
  0x22   : > { %285 = vmatpush.msra.mxu0 %v257_v2  ;;  %305 = vmatpush.msra.mxu1 %v258_v3  ;;  %v252_v13 = vld [vmem:[%s250_s16 + $0x8] sm:$0xff]  ;;  %v333_v31 = vld [vmem:[#allocation2 + $0x90] sm:$0xff]  ;;  %v338_v32 = vld [vmem:[#allocation2 + $0xb8] sm:$0xff]  ;;  %s756_s16 = scalar_lea.hbm %s755_s15, 16 }
  0x23   : > { %v372_v29 = vld [vmem:[#allocation2 + $0x1c8] sm:$0xff]  ;;  %403 = vmatpush.msra.mxu3 %v369_v26  ;;  %v370_v33 = vld [vmem:[#allocation2 + $0x1b8] sm:$0xff]  ;;  %384 = vmatpush.msra.mxu2 %v335_v27  ;;  %v365_v34 = vld [vmem:[#allocation2 + $0x190] sm:$0xff]  ;;  %p757_p0 = scmp.ne.s32.totalorder %s755_s15, %s756_s16  ;;  %p762_p4 = scmp.lt.s32.totalorder %s760_s25, %s756_s16 }
  0x24   : > { %286 = vmatpush.msra.mxu0 %v255_v4  ;;  %306 = vmatpush.msra.mxu1 %v256_v5  ;;  %v331_v35 = vld [vmem:[#allocation2 + $0x80] sm:$0xff]  ;;  %v336_v36 = vld [vmem:[#allocation2 + $0xa8] sm:$0xff]  ;;  %v329_v39 = vld [vmem:[#allocation2 + $0x70] sm:$0xff] }
  0x25   : > { %404 = vmatpush.msra.mxu3 %v367_v30  ;;  %v368_v37 = vld [vmem:[#allocation2 + $0x1a8] sm:$0xff]  ;;  %385 = vmatpush.msra.mxu2 %v333_v31  ;;  %v363_v38 = vld [vmem:[#allocation2 + $0x180] sm:$0xff]  ;;  %v334_v40 = vld [vmem:[#allocation2 + $0x98] sm:$0xff]  ;;  %p758_p1 = pnand %p757_p0, %p913_p5  ;;  %p763_p7 = por %p762_p4, %p761_p3 }
  0x26   : > { %287 = vmatpush.msra.mxu0 %v253_v7  ;;  %307 = vmatpush.msra.mxu1 %v254_v8  ;;  %v366_v41 = vld [vmem:[#allocation2 + $0x198] sm:$0xff]  ;;  %v361_v42 = vld [vmem:[#allocation2 + $0x170] sm:$0xff]  ;;  %v327_v43 = vld [vmem:[#allocation2 + $0x60] sm:$0xff] }
  0x27   : > { %405 = vmatpush.msra.mxu3 %v365_v34  ;;  %386 = vmatpush.msra.mxu2 %v331_v35  ;;  %v332_v44 = vld [vmem:[#allocation2 + $0x88] sm:$0xff]  ;;  %v359_v46 = vld [vmem:[#allocation2 + $0x160] sm:$0xff]  ;;  %v325_v47 = vld [vmem:[#allocation2 + $0x50] sm:$0xff]  ;;  %p759_p2 = pneg %p758_p1 }
  0x28   : > { %288 = vmatpush.msra.mxu0 %v251_v12  ;;  %308 = vmatpush.msra.mxu1 %v252_v13  ;;  %v364_v45 = vld [vmem:[#allocation2 + $0x188] sm:$0xff]  ;;  %v330_v48 = vld [vmem:[#allocation2 + $0x78] sm:$0xff]  ;;  %v357_v50 = vld [vmem:[#allocation2 + $0x150] sm:$0xff]  ;;  %v843_v12 = vmov 0   ;;  %v844_v13 = vmov 1  }
  0x29   : > { %635 = vmatmul.msk.f32.vlgmr.msra.gmra.mxu0 %vm262_vm1, %v261_v15  ;;  %637 = vmatmul.msk.f32.vlgmr.msra.gmra.mxu1 %vm262_vm1, %v261_v15  ;;  %v362_v49 = vld [vmem:[#allocation2 + $0x178] sm:$0xff]  ;;  %v323_v51 = vld [vmem:[#allocation2 + $0x40] sm:$0xff]  ;;  %v328_v52 = vld [vmem:[#allocation2 + $0x68] sm:$0xff]  ;;  %p764_p8 = pnand %p763_p7, %p759_p2 }
  0x2a   : > { %419 = vmatpush.msrb.mxu0 %v346_v16  ;;  %439 = vmatpush.msrb.mxu1 %v378_v17  ;;  %v360_v53 = vld [vmem:[#allocation2 + $0x168] sm:$0xff]  ;;  %v355_v54 = vld [vmem:[#allocation2 + $0x140] sm:$0xff]  ;;  %v321_v55 = vld [vmem:[#allocation2 + $0x30] sm:$0xff] }
  0x2b   : > { %406 = vmatpush.msra.mxu3 %v363_v38  ;;  %387 = vmatpush.msra.mxu2 %v329_v39  ;;  %v326_v56 = vld [vmem:[#allocation2 + $0x58] sm:$0xff]  ;;  %v353_v58 = vld [vmem:[#allocation2 + $0x130] sm:$0xff]  ;;  %v319_v59 = vld [vmem:[#allocation2 + $0x20] sm:$0xff] }
  0x2c   : > { %420 = vmatpush.msrb.mxu0 %v344_v20  ;;  %440 = vmatpush.msrb.mxu1 %v376_v21  ;;  %v358_v57 = vld [vmem:[#allocation2 + $0x158] sm:$0xff]  ;;  %v324_v60 = vld [vmem:[#allocation2 + $0x48] sm:$0xff]  ;;  %v351_v62 = vld [vmem:[#allocation2 + $0x120] sm:$0xff] }
  0x2d   : > { %407 = vmatpush.msra.mxu3 %v361_v42  ;;  %388 = vmatpush.msra.mxu2 %v327_v43  ;;  %v356_v61 = vld [vmem:[#allocation2 + $0x148] sm:$0xff]  ;;  %v317_v63 = vld [vmem:[#allocation2 + $0x10] sm:$0xff]  ;;  %v322_v0 = vld [vmem:[#allocation2 + $0x38] sm:$0xff] }
  0x2e   : > { %421 = vmatpush.msrb.mxu0 %v342_v24  ;;  %441 = vmatpush.msrb.mxu1 %v374_v25  ;;  %v354_v1 = vld [vmem:[#allocation2 + $0x138] sm:$0xff]  ;;  %v349_v2 = vld [vmem:[#allocation2 + $0x110] sm:$0xff]  ;;  %v320_v3 = vld [vmem:[#allocation2 + $0x28] sm:$0xff] }
  0x2f   : > { %408 = vmatpush.msra.mxu3 %v359_v46  ;;  %389 = vmatpush.msra.mxu2 %v325_v47  ;;  %v352_v4 = vld [vmem:[#allocation2 + $0x128] sm:$0xff]  ;;  %v318_v5 = vld [vmem:[#allocation2 + $0x18] sm:$0xff]  ;;  %v315_v7 = vld [vmem:[#allocation2] sm:$0xff] }
  0x30   : > { %422 = vmatpush.msrb.mxu0 %v340_v28  ;;  %442 = vmatpush.msrb.mxu1 %v372_v29  ;;  %v350_v6 = vld [vmem:[#allocation2 + $0x118] sm:$0xff]  ;;  %v347_v8 = vld [vmem:[#allocation2 + $0x100] sm:$0xff]  ;;  %v316_v9 = vld [vmem:[#allocation2 + $0x8] sm:$0xff] }
  0x31   : > { %409 = vmatpush.msra.mxu3 %v357_v50  ;;  %390 = vmatpush.msra.mxu2 %v323_v51  ;;  %v348_v10 = vld [vmem:[#allocation2 + $0x108] sm:$0xff]  ;;  %v459_v11 = vld [vmem:[%s1005_s3] sm:$0xff] }
  0x32   : > { %423 = vmatpush.msrb.mxu0 %v338_v32  ;;  %443 = vmatpush.msrb.mxu1 %v370_v33 }
  0x33   : > { %410 = vmatpush.msra.mxu3 %v355_v54  ;;  %391 = vmatpush.msra.mxu2 %v321_v55 }
  0x34   : > { %424 = vmatpush.msrb.mxu0 %v336_v36  ;;  %444 = vmatpush.msrb.mxu1 %v368_v37 }
  0x35   : > { %411 = vmatpush.msra.mxu3 %v353_v58  ;;  %392 = vmatpush.msra.mxu2 %v319_v59 }
  0x36   : > { %425 = vmatpush.msrb.mxu0 %v334_v40  ;;  %445 = vmatpush.msrb.mxu1 %v366_v41 }
  0x37   : > { %412 = vmatpush.msra.mxu3 %v351_v62  ;;  %393 = vmatpush.msra.mxu2 %v317_v63 }
  0x38   : > { %426 = vmatpush.msrb.mxu0 %v332_v44  ;;  %446 = vmatpush.msrb.mxu1 %v364_v45 }
  0x39   : > { %413 = vmatpush.msra.mxu3 %v349_v2  ;;  %394 = vmatpush.msra.mxu2 %v315_v7 }
  0x3a   : > { %427 = vmatpush.msrb.mxu0 %v330_v48  ;;  %447 = vmatpush.msrb.mxu1 %v362_v49 }
  0x3b   : > { %414 = vmatpush.msra.mxu3 %v347_v8  ;;  %708 = vset.pattern.permute.xlu0 %v843_v12 }
  0x3c   : > { %428 = vmatpush.msrb.mxu0 %v328_v52  ;;  %448 = vmatpush.msrb.mxu1 %v360_v53 }
  0x3d   : > { %464 = vperm.xlu0 %708, %v459_v11  }
  0x3e   : > { %429 = vmatpush.msrb.mxu0 %v326_v56  ;;  %449 = vmatpush.msrb.mxu1 %v358_v57 }
  0x40   : > { %430 = vmatpush.msrb.mxu0 %v324_v60  ;;  %450 = vmatpush.msrb.mxu1 %v356_v61 }
  0x42   : > { %431 = vmatpush.msrb.mxu0 %v322_v0  ;;  %451 = vmatpush.msrb.mxu1 %v354_v1 }
  0x44   : > { %432 = vmatpush.msrb.mxu0 %v320_v3  ;;  %452 = vmatpush.msrb.mxu1 %v352_v4 }
  0x45   : > { %709 = vset.pattern.permute.xlu0 %v844_v13 }
  0x46   : > { %433 = vmatpush.msrb.mxu0 %v318_v5  ;;  %453 = vmatpush.msrb.mxu1 %v350_v6 }
  0x47   : > { %470 = vperm.xlu0 %709, %v459_v11  }
  0x48   : > { %434 = vmatpush.msrb.mxu0 %v316_v9  ;;  %454 = vmatpush.msrb.mxu1 %v348_v10 }
  0xa6   : > { %v290_v14 = vpop.f32.mrf.mxu0  ;;  %v310_v15 = vpop.f32.mrf.mxu1 }
  0xa7   : > { %313 = vst [vmem:[%s238_s7] sm:$0xff] %v290_v14  ;;  %395 = vmatmul.f32.vlgmr.msra.gmra.mxu2 %v290_v14  ;;  %415 = vmatmul.f32.vlgmr.msra.gmra.mxu3 %v310_v15 }
  0xa8   : > { %314 = vst [vmem:[%s238_s7 + $0x8] sm:$0xff] %v310_v15  ;;  %435 = vmatmul.f32.vlgmr.msrb.gmra.mxu0 %v290_v14  ;;  %455 = vmatmul.f32.vlgmr.msrb.gmra.mxu1 %v310_v15 }
  0xa9   : > { %767 = shalt.err (!%p764_p8)
}
  0xaa   : > { %653 = dma.vmem_to_hbm [thread:$0]  (%p913_p5), %s504_s8, 256, %s506_s13, %s485_s14   ;;  %v475_v20 = vlaneseq }
  0xab   : > { %s245_s10 = scalar_lea.vmem [#allocation6], %s631_s6  ;;  %s516_s15 = scalar_lea.hbm %s1007_s5, %s646_s9 }
  0xac   : > { %v476_v24 = vand.u32 127, %v475_v20  ;;  %s518_s8 = sshll.u32 %s245_s10, 4  ;;  %s520_s13 = sshll.u32 %s516_s15, 4  ;;  %s519_s8 = int_to_ptr.vmem [resolvable:$true] %s518_s8  ;;  %s521_s13 = int_to_ptr.hbm [resolvable:$true] %s520_s13 }
  0xad   : > { %s490_s6 = scalar_lea.sflag [#allocation7], %s945_s30  ;;  %s782_s14 = sshra.s32 %s521_s13, 4  ;;  %s783_s14 = int_to_ptr.hbm [resolvable:$true] %s782_s14 }
  0xae   : > { %vm478_vm2 = vcmp.lt.s32.totalorder %v476_v24, 64  ;;  %s784_s22 = scalar_lea.hbm %s783_s14, 16  ;;  %s788_s17 = scalar_lea.hbm %s1007_s5, 32 }
  0xaf   : > { %v465_v16 = vpop.permute.xlu0 %464  ;;  %p785_p9 = scmp.ne.s32.totalorder %s783_s14, %s784_s22  ;;  %p789_p12 = scmp.lt.s32.totalorder %s783_s14, %s1007_s5 }
  0xb0   : > { %p790_p13 = scmp.lt.s32.totalorder %s788_s17, %s784_s22 }
  0xb1   : > { %p786_p10 = pnand %p785_p9, %p913_p5 }
  0xb2   : > { %p791_p0 = por %p790_p13, %p789_p12 }
  0xb3   : > { %p787_p11 = pneg %p786_p10 }
  0xb5   : > { %p792_p1 = pnand %p791_p0, %p787_p11 }
  0xb9   : > { %v471_v26 = vpop.permute.xlu0 %470 }
 0x125   : > { %v436_v17 = vpop.f32.mrf.mxu0  ;;  %v456_v18 = vpop.f32.mrf.mxu1 }
 0x126   : > { %v457_v19 = vadd.f32 %v456_v18, %v436_v17 }
 0x128   : > { %483 = vst [vmem:[%s245_s10 + $0x8] sm:$0xff] %v457_v19 }
 0x12a   : > { %v396_v21 = vpop.f32.mrf.mxu2  ;;  %v416_v22 = vpop.f32.mrf.mxu3 }
 0x12b   : > { %v417_v23 = vadd.f32 %v416_v22, %v396_v21 }
 0x12d   : > { %v460_v25 = vmax.f32 %v417_v23, 0.0 }
 0x12f   : > { %v467_v27 = vmul.f32 %v465_v16, %v460_v25 }
 0x131   : > { %v473_v28 = vadd.f32 %v471_v26, %v467_v27 }
 0x133   : > { %v480_v29 = vsel %vm478_vm2, %v473_v28, %v417_v23 }
 0x134   : > { %482 = vst [vmem:[%s245_s10] sm:$0xff] %v480_v29 }
 0x135   : > { %795 = shalt.err (!%p792_p1)
}
 0x136   : > { %654 = dma.vmem_to_hbm [thread:$0]  (%p913_p5), %s519_s8, 256, %s521_s13, %s490_s6  }
 0x137 PF: > { %p670_p2 = scmp.ge.s32.totalorder %s838_s21, 2  ;;  %s532_s30 = sand.u32 1, %s826_s18  }
 0x138   : > { %s533_s26 = scalar_lea.sflag [#allocation4], %s532_s30 }
 0x139   : > { %p662_p3 = pnand %p670_p2, %p917_p6 }
 0x13b   : > { %p663_p4 = pneg %p662_p3 }
 0x13d   : > { %817 = dma.done.wait (%p663_p4), %s533_s26, 256  }
 0x13e   : > { %819 = vsyncadd (%p663_p4), %s533_s26, 4294967040  ;;  %s543_s7 = scalar_lea.sflag [#allocation7], %s532_s30 }
 0x13f   : > { %821 = dma.done.wait (%p663_p4), %s543_s7, 256  }
 0x140   : > { %823 = vsyncadd (%p663_p4), %s543_s7, 4294967040  ;;  %p20_p5 = scmp.ge.s32.totalorder %s900_s24, 4   ;;  %s1010_s18 = smov %s830_s19 }
 0x141   : > { %s1011_s19 = smov %s834_s20  ;;  %s1012_s20 = smov %s911_s27 }
 0x142   : > { %s1013_s21 = smov %s900_s24  ;;  %22 = sbr.rel (!%p20_p5) target bundleno = 6 (0x6), region = 93 }
 0x147   :  { %549 = vsyncpa [#allocation3], 1 }
 0x148   :  { %551 = vsyncpa [#allocation3 + $0x1], 1 }
 0x149   :  { %552 = vsyncpa [#allocation4], 1 }
 0x14a   :  { %554 = vsyncpa [#allocation4 + $0x1], 1 }
 0x14b   :  { %555 = vsyncpa [#allocation7], 1 }
 0x14c   :  { %557 = vsyncpa [#allocation7 + $0x1], 1 }

</bundles_post_ra>
